<compile_context>
chip_gen: v5e
topology: v5e:2x2
jax: 0.10.0
libtpu: 0.0.40
codegen_flags: <defaults>
</compile_context>

<pallas_src>
import functools

import jax
import jax.numpy as jnp
import numpy as np
from jax.experimental import pallas as pl
from jax.experimental.pallas import tpu as pltpu


def _dmg_kernel(c_ref, ri_ref, jw_ref, *rest, TB):
    """One grid step == one block of TB batch elements.

    c_ref:     SMEM (1, 1) f32       -- 1 / (2 * sigma^2)
    ri_ref:    VMEM (H, 1)  f32      -- row ("y") coordinates 0..H-1 (resident)
    jw_ref:    VMEM (1, W)  f32      -- col ("x") coordinates 0..W-1 (resident)
    inblk_ref: VMEM (TB*L, TB*W) f32 -- block-diag batch mask (only if TB > 1)
    ys_ref:    VMEM (1, TB*L) f32    -- label y coords, label index in lanes
    xs_ref:    VMEM (TB*L, 1) f32    -- label x coords, label index in sublanes
    msk_ref:   VMEM (TB*L, 1) f32    -- 1.0 valid label, 0.0 padding
    out_ref:   VMEM (H, TB*W) f32    -- packed slab; columns [b*W,(b+1)*W) hold
                                        the density map of local batch b
    """
    if TB > 1:
        inblk_ref, ys_ref, xs_ref, msk_ref, out_ref = rest
    else:
        ys_ref, xs_ref, msk_ref, out_ref = rest

    c = c_ref[0, 0]

    # --- row ("y") factors: gy[i, g] = exp(-(i - y_g)^2 c) / sum_i exp(...)
    ri = ri_ref[...]                                    # (H, 1)
    ys = ys_ref[...]                                    # (1, TBL)
    gy = jnp.exp(-((ri - ys) ** 2) * c)                 # (H, TBL)   EUP-bound
    sy = jnp.sum(gy, axis=0, keepdims=True)             # (1, TBL)   XLU
    gy = gy * jnp.where(sy > 0.0, 1.0 / sy, 0.0)        # hidden under EUP

    # --- column ("x") factors, computed ONCE per label on a W-wide slab.
    jw = jw_ref[...]                                    # (1, W)
    xs = xs_ref[...]                                    # (TBL, 1)
    ex = jnp.exp(-((jw - xs) ** 2) * c)                 # (TBL, W)
    sx = jnp.sum(ex, axis=1, keepdims=True)             # (TBL, 1)   XLU
    gx = ex * (msk_ref[...] * jnp.where(sx > 0.0, 1.0 / sx, 0.0))   # (TBL, W)

    if TB > 1:
        # Replicate the W-wide profile across the TB lane blocks (cheap copies)
        # and zero the off-diagonal blocks so batches never mix.
        gx = jnp.concatenate([gx] * TB, axis=1) * inblk_ref[...]    # (TBL, TBW)

    # --- all labels of all TB batches accumulated by one MXU contraction.
    out_ref[...] = jnp.dot(gy, gx, preferred_element_type=jnp.float32)


def dmg_forward(batch_images, labels_xy, labels_mask, sigma, *, target_lanes=256):
    """Pallas implementation of DMG.forward.

    batch_images: (B, C, H, W)  -- only the shape is used (as in PyTorch)
    labels_xy:    (B, L, 2)     -- label coordinates (x, y)
    labels_mask:  (B, L)        -- 1.0 for valid labels, 0.0 for padding
    sigma:        scalar        -- the nn.Parameter sigma
    returns density: (B, 1, H, W) float32
    """
    B, _, H, W = batch_images.shape
    L = labels_xy.shape[1]
    if L == 0:
        return jnp.zeros((B, 1, H, W), jnp.float32)

    # Batch packing factor: aim for ~target_lanes output lanes per grid step,
    # but never pad past B (wasted compute) and keep the output block small
    # enough that double-buffering stays comfortably inside VMEM.
    TB = max(1, -(-target_lanes // W))                       # ceil(target / W)
    TB = min(TB, B)
    TB = min(TB, max(1, (4 << 20) // max(1, H * W * 4)))     # out block <= 4 MiB
    NB = -(-B // TB)
    B_pad = NB * TB

    xs = labels_xy[:, :, 0].astype(jnp.float32)
    ys = labels_xy[:, :, 1].astype(jnp.float32)
    msk = labels_mask.astype(jnp.float32)
    # Zero coordinates of masked slots so padding can never create NaN/Inf.
    xs = xs * msk
    ys = ys * msk

    pad = B_pad - B
    if pad:
        xs = jnp.pad(xs, ((0, pad), (0, 0)))
        ys = jnp.pad(ys, ((0, pad), (0, 0)))
        msk = jnp.pad(msk, ((0, pad), (0, 0)))

    TBL = TB * L
    TBW = TB * W
    ys_lane = ys.reshape(NB, 1, TBL)       # label index in lanes (feeds gy)
    xs_sub = xs.reshape(NB, TBL, 1)        # label index in sublanes (feeds gx)
    msk_sub = msk.reshape(NB, TBL, 1)

    sigma_f = jnp.asarray(sigma, jnp.float32)
    c_arr = (1.0 / (2.0 * sigma_f * sigma_f)).reshape(1, 1)

    # Grid-invariant coordinate vectors (DMA'd once, stay resident in VMEM).
    ri = jnp.arange(H, dtype=jnp.float32).reshape(H, 1)
    jw = jnp.arange(W, dtype=jnp.float32).reshape(1, W)

    operands = [c_arr, ri, jw]
    in_specs = [
        pl.BlockSpec(memory_space=pltpu.MemorySpace.SMEM),   # c (1, 1)
        pl.BlockSpec((H, 1), lambda g: (0, 0)),              # ri, resident
        pl.BlockSpec((1, W), lambda g: (0, 0)),              # jw, resident
    ]
    if TB > 1:
        # Block-diagonal batch mask, precomputed on host (no // or % in-kernel).
        li = np.arange(TBL)[:, None] // L
        ji = np.arange(TBW)[None, :] // W
        in_block = jnp.asarray((li == ji).astype(np.float32))
        operands.append(in_block)
        in_specs.append(pl.BlockSpec((TBL, TBW), lambda g: (0, 0)))  # resident
    operands += [ys_lane, xs_sub, msk_sub]
    in_specs += [
        pl.BlockSpec((None, 1, TBL), lambda g: (g, 0, 0)),
        pl.BlockSpec((None, TBL, 1), lambda g: (g, 0, 0)),
        pl.BlockSpec((None, TBL, 1), lambda g: (g, 0, 0)),
    ]

    kernel = functools.partial(_dmg_kernel, TB=TB)

    out = pl.pallas_call(
        kernel,
        out_shape=jax.ShapeDtypeStruct((NB, H, TBW), jnp.float32),
        grid=(NB,),
        in_specs=in_specs,
        out_specs=pl.BlockSpec((None, H, TBW), lambda g: (g, 0, 0)),
        compiler_params=pltpu.CompilerParams(
            dimension_semantics=("parallel",)),
    )(*operands)

    if TB == 1:
        # Pure reshape, no transpose (W already lane-dense or B too small).
        return out[:B].reshape(B, 1, H, W)

    # (NB, H, TB*W) -> (B, 1, H, W): layout plumbing on the (small) output.
    # TODO(synk): for very small W with large B this transpose could be removed
    # by a per-batch manual DMA writeback (memory_space=pl.ANY output).
    out = out.reshape(NB, H, TB, W)
    out = jnp.transpose(out, (0, 2, 1, 3)).reshape(B_pad, H, W)[:B]
    return out[:, None, :, :]


def _reference(batch_images, labels_xy, labels_mask, sigma):
    """Pure-numpy reproduction of the PyTorch forward for verification."""
    B, _, H, W = batch_images.shape
    density = np.zeros((B, 1, H, W), np.float32)
    xs = np.asarray(labels_xy)[:, :, 0]
    ys = np.asarray(labels_xy)[:, :, 1]
    mask = np.asarray(labels_mask)
    jj, ii = np.meshgrid(np.arange(W, dtype=np.float32),
                         np.arange(H, dtype=np.float32))  # jj -> x, ii -> y
    for b in range(B):
        for l in range(xs.shape[1]):
            if mask[b, l] == 0:
                continue
            g = np.exp(-((jj - xs[b, l]) ** 2 + (ii - ys[b, l]) ** 2)
                       / (2.0 * sigma * sigma))
            density[b, 0] += (g / g.sum()).astype(np.float32)
    return density


if __name__ == "__main__":
    # --- deterministic parameter init (matches DMG.__init__) ---
    initial_sigma_value = 1.5
    sigma = jnp.float32(initial_sigma_value)  # the nn.Parameter
    # TODO(synk): calculate_kernel_size()/calculate_gaussian_kernel() are dead
    # code in forward() (never used); not ported.

    # --- deterministic example inputs ---
    B, C, H, W, L = 2, 4, 16, 16, 3
    key = jax.random.PRNGKey(0)
    k_img, k_lab = jax.random.split(key)
    batch_images = jax.random.normal(k_img, (B, C, H, W), jnp.float32)
    labels_xy = jax.random.uniform(k_lab, (B, L, 2), jnp.float32,
                                   minval=0.0, maxval=float(H - 1))
    # second batch element has only 2 valid labels (variable-length lists)
    labels_mask = jnp.array([[1.0, 1.0, 1.0],
                             [1.0, 1.0, 0.0]], jnp.float32)

    density = dmg_forward(batch_images, labels_xy, labels_mask, sigma)
    density = jax.block_until_ready(density)

    ref = _reference(np.asarray(batch_images), np.asarray(labels_xy),
                     np.asarray(labels_mask), float(sigma))
    np.testing.assert_allclose(np.asarray(density), ref, rtol=1e-5, atol=1e-5)

    print("KERNEL_OK")
</pallas_src>

<mosaic_0001>
module attributes {stable_mosaic.version = 11 : i64} {
  func.func @_dmg_kernel(%arg0: i32, %arg1: memref<1x1xf32, #tpu.memory_space<smem>>, %arg2: memref<16x1xf32, #tpu.memory_space<vmem>>, %arg3: memref<1x16xf32, #tpu.memory_space<vmem>>, %arg4: memref<6x32xf32, #tpu.memory_space<vmem>>, %arg5: memref<1x1x6xf32, #tpu.memory_space<vmem>>, %arg6: memref<1x6x1xf32, #tpu.memory_space<vmem>>, %arg7: memref<1x6x1xf32, #tpu.memory_space<vmem>>, %arg8: memref<1x16x32xf32, #tpu.memory_space<vmem>>) attributes {dimension_semantics = [#tpu.dimension_semantics<parallel>], iteration_bounds = array<i64: 1>, scalar_prefetch = 0 : i64, scratch_operands = 0 : i64, tpu.core_type = #tpu.core_type<tc>, window_params = [{transform_indices = @transform_0, window_bounds = array<i64: 1, 1>}, {pipeline_mode = #tpu.pipeline_mode<synchronous>, transform_indices = @transform_1, window_bounds = array<i64: 16, 1>}, {pipeline_mode = #tpu.pipeline_mode<synchronous>, transform_indices = @transform_2, window_bounds = array<i64: 1, 16>}, {pipeline_mode = #tpu.pipeline_mode<synchronous>, transform_indices = @transform_3, window_bounds = array<i64: 6, 32>}, {transform_indices = @transform_4, window_bounds = array<i64: 1, 1, 6>}, {transform_indices = @transform_5, window_bounds = array<i64: 1, 6, 1>}, {transform_indices = @transform_6, window_bounds = array<i64: 1, 6, 1>}, {transform_indices = @transform_7, window_bounds = array<i64: 1, 16, 32>}]} {
    %c0 = arith.constant 0 : index
    %c0_0 = arith.constant 0 : index
    %0 = memref.load %arg1[%c0, %c0_0] : memref<1x1xf32, #tpu.memory_space<smem>>
    %c0_1 = arith.constant 0 : index
    %c0_2 = arith.constant 0 : index
    %1 = vector.load %arg2[%c0_1, %c0_2] : memref<16x1xf32, #tpu.memory_space<vmem>>, vector<16x1xf32>
    %c0_3 = arith.constant 0 : index
    %c0_4 = arith.constant 0 : index
    %c0_5 = arith.constant 0 : index
    %2 = vector.load %arg5[%c0_3, %c0_4, %c0_5] : memref<1x1x6xf32, #tpu.memory_space<vmem>>, vector<1x1x6xf32>
    %3 = vector.shape_cast %2 : vector<1x1x6xf32> to vector<1x6xf32>
    %4 = vector.broadcast %1 : vector<16x1xf32> to vector<16x6xf32>
    %5 = vector.broadcast %3 : vector<1x6xf32> to vector<16x6xf32>
    %6 = arith.subf %4, %5 : vector<16x6xf32>
    %7 = arith.mulf %6, %6 : vector<16x6xf32>
    %cst = arith.constant 0.000000e+00 : f32
    %8 = vector.broadcast %cst : f32 to vector<16x6xf32>
    %9 = arith.subf %8, %7 : vector<16x6xf32>
    %10 = vector.broadcast %0 : f32 to vector<16x6xf32>
    %11 = arith.mulf %9, %10 : vector<16x6xf32>
    %12 = math.exp %11 : vector<16x6xf32>
    %cst_6 = arith.constant dense<0.000000e+00> : vector<6xf32>
    %13 = vector.multi_reduction <add>, %12, %cst_6 [0] : vector<16x6xf32> to vector<6xf32>
    %14 = vector.shape_cast %13 : vector<6xf32> to vector<1x6xf32>
    %cst_7 = arith.constant 0.000000e+00 : f32
    %15 = vector.broadcast %cst_7 : f32 to vector<1x6xf32>
    %16 = arith.cmpf ogt, %14, %15 : vector<1x6xf32>
    %cst_8 = arith.constant 1.000000e+00 : f32
    %17 = vector.broadcast %cst_8 : f32 to vector<1x6xf32>
    %18 = arith.divf %17, %14 : vector<1x6xf32>
    %cst_9 = arith.constant 0.000000e+00 : f32
    %19 = vector.broadcast %cst_9 : f32 to vector<1x6xf32>
    %20 = arith.select %16, %18, %19 : vector<1x6xi1>, vector<1x6xf32>
    %21 = vector.broadcast %20 : vector<1x6xf32> to vector<16x6xf32>
    %22 = arith.mulf %12, %21 : vector<16x6xf32>
    %c0_10 = arith.constant 0 : index
    %c0_11 = arith.constant 0 : index
    %23 = vector.load %arg3[%c0_10, %c0_11] : memref<1x16xf32, #tpu.memory_space<vmem>>, vector<1x16xf32>
    %c0_12 = arith.constant 0 : index
    %c0_13 = arith.constant 0 : index
    %c0_14 = arith.constant 0 : index
    %24 = vector.load %arg6[%c0_12, %c0_13, %c0_14] : memref<1x6x1xf32, #tpu.memory_space<vmem>>, vector<1x6x1xf32>
    %25 = vector.shape_cast %24 : vector<1x6x1xf32> to vector<6x1xf32>
    %26 = vector.broadcast %23 : vector<1x16xf32> to vector<6x16xf32>
    %27 = vector.broadcast %25 : vector<6x1xf32> to vector<6x16xf32>
    %28 = arith.subf %26, %27 : vector<6x16xf32>
    %29 = arith.mulf %28, %28 : vector<6x16xf32>
    %cst_15 = arith.constant 0.000000e+00 : f32
    %30 = vector.broadcast %cst_15 : f32 to vector<6x16xf32>
    %31 = arith.subf %30, %29 : vector<6x16xf32>
    %32 = vector.broadcast %0 : f32 to vector<6x16xf32>
    %33 = arith.mulf %31, %32 : vector<6x16xf32>
    %34 = math.exp %33 : vector<6x16xf32>
    %cst_16 = arith.constant dense<0.000000e+00> : vector<6xf32>
    %35 = vector.multi_reduction <add>, %34, %cst_16 [1] : vector<6x16xf32> to vector<6xf32>
    %36 = vector.shape_cast %35 : vector<6xf32> to vector<6x1xf32>
    %c0_17 = arith.constant 0 : index
    %c0_18 = arith.constant 0 : index
    %c0_19 = arith.constant 0 : index
    %37 = vector.load %arg7[%c0_17, %c0_18, %c0_19] : memref<1x6x1xf32, #tpu.memory_space<vmem>>, vector<1x6x1xf32>
    %38 = vector.shape_cast %37 : vector<1x6x1xf32> to vector<6x1xf32>
    %cst_20 = arith.constant 0.000000e+00 : f32
    %39 = vector.broadcast %cst_20 : f32 to vector<6x1xf32>
    %40 = arith.cmpf ogt, %36, %39 : vector<6x1xf32>
    %cst_21 = arith.constant 1.000000e+00 : f32
    %41 = vector.broadcast %cst_21 : f32 to vector<6x1xf32>
    %42 = arith.divf %41, %36 : vector<6x1xf32>
    %cst_22 = arith.constant 0.000000e+00 : f32
    %43 = vector.broadcast %cst_22 : f32 to vector<6x1xf32>
    %44 = arith.select %40, %42, %43 : vector<6x1xi1>, vector<6x1xf32>
    %45 = arith.mulf %38, %44 : vector<6x1xf32>
    %46 = vector.broadcast %45 : vector<6x1xf32> to vector<6x16xf32>
    %47 = arith.mulf %34, %46 : vector<6x16xf32>
    %48 = tpu.concatenate %47, %47 in 1 : vector<6x16xf32>, vector<6x16xf32> -> vector<6x32xf32>
    %c0_23 = arith.constant 0 : index
    %c0_24 = arith.constant 0 : index
    %49 = vector.load %arg4[%c0_23, %c0_24] : memref<6x32xf32, #tpu.memory_space<vmem>>, vector<6x32xf32>
    %50 = arith.mulf %48, %49 : vector<6x32xf32>
    %cst_25 = arith.constant dense<0.000000e+00> : vector<16x32xf32>
    %51 = tpu.matmul %22, %50, %cst_25 {dimension_numbers = #tpu.dot_dimension_numbers<[1], [0], [0], [1], [0, 0, 1, 1], [], []>} : vector<16x6xf32>, vector<6x32xf32>, vector<16x32xf32> -> vector<16x32xf32>
    %c0_26 = arith.constant 0 : index
    %c0_27 = arith.constant 0 : index
    %c0_28 = arith.constant 0 : index
    %52 = vector.load %arg8[%c0_26, %c0_27, %c0_28] : memref<1x16x32xf32, #tpu.memory_space<vmem>>, vector<1x16x32xf32>
    %53 = vector.shape_cast %52 : vector<1x16x32xf32> to vector<16x32xf32>
    %54 = vector.shape_cast %51 : vector<16x32xf32> to vector<1x16x32xf32>
    tpu.vector_store %arg8[%c0_26, %c0_27, %c0_28], %54 {strides = array<i32>} : memref<1x16x32xf32, #tpu.memory_space<vmem>>, vector<1x16x32xf32>,
    return
  }
  func.func @transform_0(%arg0: i32) -> (i32, i32) {
    %c0_i32 = arith.constant 0 : i32
    %c0_i32_0 = arith.constant 0 : i32
    %c0_i32_1 = arith.constant 0 : i32
    return %c0_i32, %c0_i32_0 : i32, i32
  }
  func.func @transform_1(%arg0: i32) -> (i32, i32) {
    %c0_i32 = arith.constant 0 : i32
    %c0_i32_0 = arith.constant 0 : i32
    %c0_i32_1 = arith.constant 0 : i32
    return %c0_i32, %c0_i32_0 : i32, i32
  }
  func.func @transform_2(%arg0: i32) -> (i32, i32) {
    %c0_i32 = arith.constant 0 : i32
    %c0_i32_0 = arith.constant 0 : i32
    %c0_i32_1 = arith.constant 0 : i32
    return %c0_i32, %c0_i32_0 : i32, i32
  }
  func.func @transform_3(%arg0: i32) -> (i32, i32) {
    %c0_i32 = arith.constant 0 : i32
    %c0_i32_0 = arith.constant 0 : i32
    %c0_i32_1 = arith.constant 0 : i32
    return %c0_i32, %c0_i32_0 : i32, i32
  }
  func.func @transform_4(%arg0: i32) -> (i32, i32, i32) {
    %c0_i32 = arith.constant 0 : i32
    %c0_i32_0 = arith.constant 0 : i32
    %c0_i32_1 = arith.constant 0 : i32
    return %arg0, %c0_i32, %c0_i32_0 : i32, i32, i32
  }
  func.func @transform_5(%arg0: i32) -> (i32, i32, i32) {
    %c0_i32 = arith.constant 0 : i32
    %c0_i32_0 = arith.constant 0 : i32
    %c0_i32_1 = arith.constant 0 : i32
    return %arg0, %c0_i32, %c0_i32_0 : i32, i32, i32
  }
  func.func @transform_6(%arg0: i32) -> (i32, i32, i32) {
    %c0_i32 = arith.constant 0 : i32
    %c0_i32_0 = arith.constant 0 : i32
    %c0_i32_1 = arith.constant 0 : i32
    return %arg0, %c0_i32, %c0_i32_0 : i32, i32, i32
  }
  func.func @transform_7(%arg0: i32) -> (i32, i32, i32) {
    %c0_i32 = arith.constant 0 : i32
    %c0_i32_0 = arith.constant 0 : i32
    %c0_i32_1 = arith.constant 0 : i32
    return %arg0, %c0_i32, %c0_i32_0 : i32, i32, i32
  }
}

</mosaic_0001>

<bundles_post_ra>
// kernel: tpu_custom_call.1
= control target key start
LH: loop header
LB: loop body
LE: loop exit
PB: predicated region body
PF: predicated region fallthrough
CT: control target
= control target key end

     0   :  { %v244_v1 = vmov 0   ;;  %s320_s0 = inlined_call_operand.<no memory space> [shape: f32[1,1], index: 0, kind: input, shape index: {}]   ;;  %s321_s1 = inlined_call_operand.vmem [shape: f32[16,1], index: 1, kind: input, shape index: {}]   ;;  %s322_s2 = inlined_call_operand.vmem [shape: f32[1,16], index: 2, kind: input, shape index: {}]   ;;  %s323_s3 = inlined_call_operand.vmem [shape: f32[6,32], index: 3, kind: input, shape index: {}]   ;;  %s324_s4 = inlined_call_operand.vmem [shape: f32[1,1,6], index: 4, kind: input, shape index: {}]   ;;  %s325_s5 = inlined_call_operand.vmem [shape: f32[1,6,1], index: 5, kind: input, shape index: {}]   ;;  %s326_s6 = inlined_call_operand.vmem [shape: f32[1,6,1], index: 6, kind: input, shape index: {}]   ;;  %s327_s7 = inlined_call_operand.hbm [shape: f32[1,16,32], index: 7, kind: output, shape index: {}]  }
   0x1   :  { %v88_v0 = vld [vmem:[%s325_s5] sm:$0x3f]  ;;  %203 = vset.pattern.permute.xlu0 %v244_v1  ;;  %204 = vset.pattern.permute.xlu1 %v244_v1 }
   0x2   :  { %13 = vsyncpa [#allocation4], 0  ;;  %94 = vperm.xlu0 %203, %v88_v0   ;;  %205 = vset.pattern.permute.xlu2 %v244_v1  ;;  %v29_v2 = vld [vmem:[%s321_s1] sm:$0xff]  ;;  %v51_v7 = vstv %s320_s0  ;;  %vm103_vm0 = vcmask 128000   ;;  %v30_v13 = vld [vmem:[%s321_s1 + $0x8] sm:$0xff]  ;;  %s245_s11 = smov 16  }
   0x3   :  { %34 = vperm.xlu1 %204, %v29_v2   ;;  %v206_v3 = vld [vmem:[%s322_s2] ss:$0 sm:$0xff]  ;;  %vm58_vm6 = vcmask 48128   ;;  %vm136_vm12 = vcmask 130048   ;;  %vm146_vm13 = vcmask 1045504   ;;  %s246_s12 = smov [#allocation3]  }
   0x4   :  { %v107_v23 = vld [vmem:[%s326_s6] sm:$0x3f]  ;;  %s180_s13 = sshll.u32 %s246_s12, 4  ;;  %s182_s16 = sshll.u32 %s327_s7, 4  ;;  %vm173_vm14 = vcmask 261120   ;;  %s181_s13 = int_to_ptr.vmem [resolvable:$true] %s180_s13  ;;  %s183_s16 = int_to_ptr.hbm [resolvable:$true] %s182_s16 }
   0x5   :  { %v207_v29 = vld [vmem:[%s324_s4] ss:$0 sm:$0xff]  ;;  %s248_s17 = smov 8  }
   0x6   :  { %v138_v0 = vld [vmem:[%s323_s3] sm:$0x3f]  ;;  %s247_s3 = smov 128  }
   0xb   :  { %39 = vperm.xlu1 %204, %v30_v13  }
  0x74   :  { %v95_v4 = vpop.permute.xlu0 %94 }
  0x75   :  { %v97_v5 = vsub.f32 %v206_v3, %v95_v4  ;;  %v35_v28 = vpop.permute.xlu1 %34 }
  0x76   :  { %v45_v32 = vsub.f32 %v35_v28, %v207_v29 }
  0x77   :  { %v98_v6 = vmul.f32 %v97_v5, %v97_v5 }
  0x78   :  { %v47_v35 = vmul.f32 %v45_v32, %v45_v32 }
  0x79   :  { %v99_v8 = vsub.f32 0.0, %v98_v6 }
  0x7a   :  { %v49_v37 = vsub.f32 0.0, %v47_v35 }
  0x7b   :  { %v100_v9 = vmul.f32 %v99_v8, %v51_v7 }
  0x7c   :  { %v52_v39 = vmul.f32 %v51_v7, %v49_v37 }
  0x7d   :  { %v101_v10 = vmul.f32 1.442695, %v100_v9  ;;  %v40_v30 = vpop.permute.xlu1 %39 }
  0x7e   :  { %v46_v34 = vsub.f32 %v40_v30, %v207_v29  ;;  %v54_v41 = vmul.f32 1.442695, %v52_v39 }
  0x7f   :  { %208 = vpow2.f32 %v101_v10 }
  0x80   :  { %v48_v36 = vmul.f32 %v46_v34, %v46_v34 }
  0x82   :  { %v50_v38 = vsub.f32 0.0, %v48_v36 }
  0x84   :  { %v53_v40 = vmul.f32 %v51_v7, %v50_v38 }
  0x85   :  { %v209_v11 = vpop.eup %208 }
  0x86   :  { %v104_v12 = vsel %vm103_vm0, %v209_v11, 0.0  ;;  %v56_v42 = vmul.f32 1.442695, %v53_v40 }
  0x87   :  { %105 = vadd.xlane.f32.xlu0 %v104_v12 }
  0xfa   :  { %v106_v14 = vpop.xlane.xlu0 %105 }
  0xfb   :  { %210 = vrcp.f32 %v106_v14  ;;  %v120_v18 = vand.u32 2147483648, %v106_v14  ;;  %v118_v20 = vand.u32 2147483647, %v106_v14  ;;  %vm114_vm2 = vweird.f32 %v106_v14 }
  0xfc   :  { %vm108_vm5 = vcmp.gt.f32.partialorder %v106_v14, 0.0  ;;  %212 = vpow2.f32 %v54_v41 }
  0xfd   :  { %v121_v22 = vor.u32 1.1754944e-38, %v120_v18  ;;  %vm119_vm4 = vcmp.eq.f32.partialorder %v118_v20, 8.507059e+37  ;;  %214 = vpow2.f32 %v56_v42 }
 0x101   :  { %v211_v15 = vpop.eup %210 }
 0x102   :  { %v110_v16 = vmul.f32 %v211_v15, %v106_v14  ;;  %vm115_vm1 = vweird.f32 %v211_v15  ;;  %v213_v43 = vpop.eup %212 }
 0x103   :  { %vm116_vm3 = vmor %vm114_vm2, %vm115_vm1  ;;  %v215_v44 = vpop.eup %214  ;;  %v59_v45 = vsel %vm58_vm6, %v213_v43, 0.0 }
 0x104   :  { %v111_v17 = vsub.f32 1.0, %v110_v16  ;;  %v60_v46 = vsel %vm58_vm6, %v215_v44, 0.0 }
 0x105   :  { %v61_v47 = vadd.f32 %v60_v46, %v59_v45 }
 0x106   :  { %v112_v19 = vmul.f32 %v211_v15, %v111_v17 }
 0x107   :  { %v62_v48 = vrot.slane %v61_v47, 4 }
 0x108   :  { %v113_v21 = vadd.f32 %v211_v15, %v112_v19 }
 0x109   :  { %v63_v49 = vadd.f32 %v62_v48, %v61_v47 }
 0x10a   :  { %v117_v24 = vsel %vm116_vm3, %v211_v15, %v113_v21 }
 0x10b   :  { %v122_v25 = vsel %vm119_vm4, %v121_v22, %v117_v24  ;;  %v64_v50 = vrot.slane %v63_v49, 2 }
 0x10c   :  { %v124_v26 = vsel %vm108_vm5, %v122_v25, 0.0 }
 0x10d   :  { %v125_v27 = vmul.f32 %v124_v26, %v107_v23  ;;  %v65_v51 = vadd.f32 %v64_v50, %v63_v49 }
 0x10f   :  { %128 = vperm.xlu2 %205, %v125_v27   ;;  %v66_v52 = vrot.slane %v65_v51, 1 }
 0x111   :  { %v67_v53 = vadd.f32 %v66_v52, %v65_v51 }
 0x113   :  { %216 = vrcp.f32 %v67_v53  ;;  %vm74_vm7 = vweird.f32 %v67_v53  ;;  %v80_v58 = vand.u32 2147483648, %v67_v53  ;;  %v78_v60 = vand.u32 2147483647, %v67_v53 }
 0x114   :  { %vm68_vm11 = vcmp.gt.f32.partialorder %v67_v53, 0.0 }
 0x115   :  { %v81_v61 = vor.u32 1.1754944e-38, %v80_v58  ;;  %vm79_vm10 = vcmp.eq.f32.partialorder %v78_v60, 8.507059e+37 }
 0x119   :  { %v217_v54 = vpop.eup %216 }
 0x11a   :  { %v70_v55 = vmul.f32 %v217_v54, %v67_v53  ;;  %vm75_vm8 = vweird.f32 %v217_v54 }
 0x11b   :  { %vm76_vm9 = vmor %vm74_vm7, %vm75_vm8 }
 0x11c   :  { %v71_v56 = vsub.f32 1.0, %v70_v55 }
 0x11e   :  { %v72_v57 = vmul.f32 %v217_v54, %v71_v56 }
 0x120   :  { %v73_v59 = vadd.f32 %v217_v54, %v72_v57 }
 0x122   :  { %v77_v62 = vsel %vm76_vm9, %v217_v54, %v73_v59 }
 0x123   :  { %v82_v63 = vsel %vm79_vm10, %v81_v61, %v77_v62 }
 0x124   :  { %v84_v2 = vsel %vm68_vm11, %v82_v63, 0.0 }
 0x125   :  { %v85_v5 = vmul.f32 %v213_v43, %v84_v2  ;;  %v86_v6 = vmul.f32 %v215_v44, %v84_v2 }
 0x169   :  { %v129_v31 = vpop.permute.xlu2 %128 }
 0x16a   :  { %v131_v33 = vmul.f32 %v209_v11, %v129_v31 }
 0x16c   :  { %133 = vrot.lane.b32.xlu2 %v131_v33, %s245_s11 }
 0x1c6   :  { %v134_v1 = vpop.permute.xlu2 %133 }
 0x1c7   :  { %v137_v3 = vsel %vm136_vm12, %v131_v33, %v134_v1 }
 0x1c8   :  { %v139_v4 = vmul.f32 %v138_v0, %v137_v3 }
 0x1ca   :  { %194 = vmatpush.msk.msra.mxu0 %vm146_vm13, %v139_v4  ;;  %197 = vmatpush.msk.msra.mxu1 %vm146_vm13, %v139_v4 }
 0x1cb   :  { %195 = vmatmul.msk.f32.vlgmr.msra.gmra.mxu0 %vm58_vm6, %v85_v5  ;;  %196 = vmatmul.msk.f32.vlgmr.msra.gmra.mxu1 %vm58_vm6, %v86_v6 }
 0x248   :  { %v167_v7 = vpop.f32.mrf.mxu0  ;;  %v170_v8 = vpop.f32.mrf.mxu1 }
 0x249   :  { %174 = vst.msk [vmem:[#allocation3] sm:$0xff] %vm173_vm14, %v167_v7 }
 0x24a   :  { %175 = vst.msk [vmem:[#allocation3 + $0x8] sm:$0xff] %vm173_vm14, %v170_v8 }
 0x24b   :  { %188 = dma.vmem_to_hbm [thread:$0]  %s181_s13, 256, %s183_s16, [#allocation4], %s247_s3, %s247_s3, %s248_s17  }
 0x24c   :  { %242 = dma.done.wait [#allocation4], 256  }
 0x24d   :  { %243 = vsyncadd [#allocation4], 4294967040 }
 0x24e   :  { %193 = vsyncpa [#allocation4], 1 }

</bundles_post_ra>
